<compile_context>
chip_gen: v7x
topology: tpu7x:2x2x1
jax: 0.10.0
libtpu: 0.0.40
codegen_flags: <defaults>
</compile_context>

<pallas_src>
import jax
import jax.numpy as jnp
from jax.experimental import pallas as pl
from jax.experimental.pallas import tpu as pltpu


def critic_kernel(x_ref, wenc_ref, wmlp_ref, vecs_ref, proj_ref, o_ref):
    rows, _ = x_ref.shape            # rows = TB * L (already flattened)
    E = wenc_ref.shape[1]
    TB = o_ref.shape[0]
    L = rows // TB

    # Packed (1, E) vectors -- read once per step; constant index_maps mean the
    # backing blocks are never re-DMA'd across grid steps.
    benc  = vecs_ref[0:1, :]
    b1a   = vecs_ref[1:2, :]
    b2a   = vecs_ref[2:3, :]
    b1b   = vecs_ref[3:4, :]
    b2b   = vecs_ref[4:5, :]
    gamma = vecs_ref[5:6, :]
    beta  = vecs_ref[6:7, :]
    wdec  = vecs_ref[7:8, :]         # decoder weight stored as a (1, E) row

    x = x_ref[...]                   # (TB*L, Din)

    # encoder linear: D_in -> E
    h = jnp.dot(x, wenc_ref[...], preferred_element_type=jnp.float32) + benc
    # Mlp block 1: fc2(tanh(fc1(h)))
    t = jnp.tanh(jnp.dot(h, wmlp_ref[0], preferred_element_type=jnp.float32) + b1a)
    h = jnp.dot(t, wmlp_ref[1], preferred_element_type=jnp.float32) + b2a
    # Mlp block 2
    t = jnp.tanh(jnp.dot(h, wmlp_ref[2], preferred_element_type=jnp.float32) + b1b)
    h = jnp.dot(t, wmlp_ref[3], preferred_element_type=jnp.float32) + b2b

    # LayerNorm over the embedding dim (eps = 1e-6)
    mean = jnp.mean(h, axis=-1, keepdims=True)
    var = jnp.mean((h - mean) ** 2, axis=-1, keepdims=True)
    h = (h - mean) * jax.lax.rsqrt(var + 1e-6)
    h = h * gamma + beta

    # decoder E -> 1 as an XLU lane reduce (leading-dim split reshape only).
    # bdec is pre-folded into the projection bias in the wrapper.
    d = jnp.sum(h.reshape(TB, L, E) * wdec, axis=-1)                  # (TB, L)

    # projection over the token axis: (TB, L) @ (L, O) + folded bias
    wproj = proj_ref[0:L, :]
    bfold = proj_ref[L:L + 1, :]
    o_ref[...] = (jnp.dot(d, wproj, preferred_element_type=jnp.float32)
                  + bfold).astype(o_ref.dtype)


def _pick_grid(batch, seq_len, row_target=512):
    """Return (TB, nblk): batch-block size and number of grid steps.

    Each grid step carries ~600 cycles of fixed pipeline overhead, so we want
    few, fat steps.  A single step handles the whole batch unless it exceeds
    `row_target` GEMM rows; when splitting, TB is kept a multiple of 8 so the
    (TB*L, D) / (TB, O) blocks stay on the (8, 128) sublane tiling.  This also
    means v7x's two TensorCores only get separate blocks when each shard has
    real work; on single-TC v5e/v6e the single block avoids a pointless loop.
    """
    rows = batch * seq_len
    if rows <= row_target:
        return batch, 1
    tb = max(1, row_target // seq_len)
    tb = max(8, (tb // 8) * 8)
    nblk = -(-batch // tb)            # cdiv; batch is zero-padded to nblk*tb
    return tb, nblk


def critic_forward(x, params, row_target=512):
    B, L, Din = x.shape
    E = params["wenc"].shape[1]
    O = params["wproj"].shape[1]

    TB, nblk = _pick_grid(B, L, row_target)
    B_pad = TB * nblk

    # Flatten tokens in the wrapper (free in XLA); zero-pad odd batches so the
    # grid stays minimal instead of degrading to TB=1.
    x2 = x.reshape(B * L, Din)
    if B_pad != B:
        x2 = jnp.pad(x2, ((0, (B_pad - B) * L), (0, 0)))

    # Pack weights into 5 kernel operands, all with constant index_maps.
    wmlp = jnp.stack([params["w1a"], params["w2a"], params["w1b"], params["w2b"]],
                     axis=0)                                          # (4, E, E)
    vecs = jnp.concatenate([params["benc"], params["b1a"], params["b2a"],
                            params["b1b"], params["b2b"],
                            params["gamma"], params["beta"],
                            params["wdec"].T], axis=0)                # (8, E)
    # Fold the decoder bias into the projection bias:
    #   out = ((h @ wdec) + bdec) @ wproj + bproj
    #       = (h @ wdec) @ wproj + (bdec * sum_l wproj[l,:] + bproj)
    bfold = (params["bdec"][0, 0] * jnp.sum(params["wproj"], axis=0, keepdims=True)
             + params["bproj"])                                       # (1, O)
    projp = jnp.concatenate([params["wproj"], bfold], axis=0)         # (L+1, O)

    # Explicit VMEM budget: double-buffered blocks + slack for GEMM-chain
    # intermediates (everything f32 here).
    blk_bytes = 4 * (TB * L * Din + Din * E + 4 * E * E + 8 * E
                     + (L + 1) * O + TB * O)
    work_bytes = 4 * 6 * TB * L * max(E, Din)
    vmem_limit = int(min(max(2 * (2 * blk_bytes + work_bytes), 8 << 20), 96 << 20))

    out = pl.pallas_call(
        critic_kernel,
        out_shape=jax.ShapeDtypeStruct((B_pad, O), jnp.float32),
        grid_spec=pltpu.PrefetchScalarGridSpec(
            num_scalar_prefetch=0,
            grid=(nblk,),
            in_specs=[
                pl.BlockSpec((TB * L, Din), lambda i: (i, 0)),
                pl.BlockSpec((Din, E), lambda i: (0, 0)),
                pl.BlockSpec((4, E, E), lambda i: (0, 0, 0)),
                pl.BlockSpec((8, E), lambda i: (0, 0)),
                pl.BlockSpec((L + 1, O), lambda i: (0, 0)),
            ],
            out_specs=pl.BlockSpec((TB, O), lambda i: (i, 0)),
        ),
        compiler_params=pltpu.CompilerParams(
            dimension_semantics=("parallel",) if nblk > 1 else ("arbitrary",),
            vmem_limit_bytes=vmem_limit,
        ),
    )(x2, params["wenc"], wmlp, vecs, projp)
    return out[:B]


def critic_ref(x, p):
    """Pure-JAX reference of the PyTorch forward."""
    h = x @ p["wenc"] + p["benc"]
    h = jnp.tanh(h @ p["w1a"] + p["b1a"]) @ p["w2a"] + p["b2a"]
    h = jnp.tanh(h @ p["w1b"] + p["b1b"]) @ p["w2b"] + p["b2b"]
    mean = h.mean(-1, keepdims=True)
    var = ((h - mean) ** 2).mean(-1, keepdims=True)
    h = (h - mean) / jnp.sqrt(var + 1e-6) * p["gamma"] + p["beta"]
    d = (h @ p["wdec"] + p["bdec"]).squeeze(-1)        # (B, L)
    return d @ p["wproj"] + p["bproj"]                 # (B, O)


def _xavier(key, fan_in, fan_out):
    bound = jnp.sqrt(6.0 / (fan_in + fan_out))
    # stored as (in, out) == transpose of PyTorch's (out, in) weight
    return jax.random.uniform(key, (fan_in, fan_out), jnp.float32, -bound, bound)


def make_params(key, L, Din, E, O):
    ks = jax.random.split(key, 8)
    z = lambda *s: jnp.zeros(s, jnp.float32)
    return {
        "wenc": _xavier(ks[0], Din, E), "benc": z(1, E),
        "w1a": _xavier(ks[1], E, E),    "b1a": z(1, E),
        "w2a": _xavier(ks[2], E, E),    "b2a": z(1, E),
        "w1b": _xavier(ks[3], E, E),    "b1b": z(1, E),
        "w2b": _xavier(ks[4], E, E),    "b2b": z(1, E),
        "gamma": jnp.ones((1, E), jnp.float32), "beta": z(1, E),
        "wdec": _xavier(ks[5], E, 1),   "bdec": z(1, 1),
        "wproj": _xavier(ks[6], L, O),  "bproj": z(1, O),
    }


if __name__ == "__main__":
    # small shapes consistent with the module: input_size=(L, Din), embed_dim=E
    B, L, Din, E, O = 4, 8, 32, 32, 3

    key = jax.random.PRNGKey(0)
    kx, kp = jax.random.split(key)
    x = jax.random.normal(kx, (B, L, Din), jnp.float32)
    params = make_params(kp, L, Din, E, O)

    out = critic_forward(x, params)
    out = jax.block_until_ready(out)

    ref = critic_ref(x, params)
    assert out.shape == (B, O), out.shape
    assert jnp.allclose(out, ref, rtol=1e-5, atol=1e-5), (out, ref)
    print("KERNEL_OK")
</pallas_src>

<mosaic_0001>
module attributes {stable_mosaic.version = 11 : i64} {
  func.func @critic_kernel(%arg0: i32, %arg1: memref<32x32xf32, #tpu.memory_space<vmem>>, %arg2: memref<32x32xf32, #tpu.memory_space<vmem>>, %arg3: memref<4x32x32xf32, #tpu.memory_space<vmem>>, %arg4: memref<8x32xf32, #tpu.memory_space<vmem>>, %arg5: memref<9x3xf32, #tpu.memory_space<vmem>>, %arg6: memref<4x3xf32, #tpu.memory_space<vmem>>) attributes {dimension_semantics = [#tpu.dimension_semantics<arbitrary>], iteration_bounds = array<i64: 1>, scalar_prefetch = 0 : i64, scratch_operands = 0 : i64, tpu.core_type = #tpu.core_type<tc>, window_params = [{transform_indices = @transform_0, window_bounds = array<i64: 32, 32>}, {pipeline_mode = #tpu.pipeline_mode<synchronous>, transform_indices = @transform_1, window_bounds = array<i64: 32, 32>}, {pipeline_mode = #tpu.pipeline_mode<synchronous>, transform_indices = @transform_2, window_bounds = array<i64: 4, 32, 32>}, {pipeline_mode = #tpu.pipeline_mode<synchronous>, transform_indices = @transform_3, window_bounds = array<i64: 8, 32>}, {pipeline_mode = #tpu.pipeline_mode<synchronous>, transform_indices = @transform_4, window_bounds = array<i64: 9, 3>}, {transform_indices = @transform_5, window_bounds = array<i64: 4, 3>}]} {
    %c0 = arith.constant 0 : index
    %c0_0 = arith.constant 0 : index
    %0 = vector.load %arg4[%c0, %c0_0] : memref<8x32xf32, #tpu.memory_space<vmem>>, vector<1x32xf32>
    %c1 = arith.constant 1 : index
    %c0_1 = arith.constant 0 : index
    %1 = vector.load %arg4[%c1, %c0_1] : memref<8x32xf32, #tpu.memory_space<vmem>>, vector<1x32xf32>
    %c2 = arith.constant 2 : index
    %c0_2 = arith.constant 0 : index
    %2 = vector.load %arg4[%c2, %c0_2] : memref<8x32xf32, #tpu.memory_space<vmem>>, vector<1x32xf32>
    %c3 = arith.constant 3 : index
    %c0_3 = arith.constant 0 : index
    %3 = vector.load %arg4[%c3, %c0_3] : memref<8x32xf32, #tpu.memory_space<vmem>>, vector<1x32xf32>
    %c4 = arith.constant 4 : index
    %c0_4 = arith.constant 0 : index
    %4 = vector.load %arg4[%c4, %c0_4] : memref<8x32xf32, #tpu.memory_space<vmem>>, vector<1x32xf32>
    %c5 = arith.constant 5 : index
    %c0_5 = arith.constant 0 : index
    %5 = vector.load %arg4[%c5, %c0_5] : memref<8x32xf32, #tpu.memory_space<vmem>>, vector<1x32xf32>
    %c6 = arith.constant 6 : index
    %c0_6 = arith.constant 0 : index
    %6 = vector.load %arg4[%c6, %c0_6] : memref<8x32xf32, #tpu.memory_space<vmem>>, vector<1x32xf32>
    %c7 = arith.constant 7 : index
    %c0_7 = arith.constant 0 : index
    %7 = vector.load %arg4[%c7, %c0_7] : memref<8x32xf32, #tpu.memory_space<vmem>>, vector<1x32xf32>
    %c0_8 = arith.constant 0 : index
    %c0_9 = arith.constant 0 : index
    %8 = vector.load %arg1[%c0_8, %c0_9] : memref<32x32xf32, #tpu.memory_space<vmem>>, vector<32x32xf32>
    %c0_10 = arith.constant 0 : index
    %c0_11 = arith.constant 0 : index
    %9 = vector.load %arg2[%c0_10, %c0_11] : memref<32x32xf32, #tpu.memory_space<vmem>>, vector<32x32xf32>
    %cst = arith.constant dense<0.000000e+00> : vector<32x32xf32>
    %10 = tpu.matmul %8, %9, %cst {dimension_numbers = #tpu.dot_dimension_numbers<[1], [0], [0], [1], [0, 0, 1, 1], [], []>} : vector<32x32xf32>, vector<32x32xf32>, vector<32x32xf32> -> vector<32x32xf32>
    %11 = vector.broadcast %0 : vector<1x32xf32> to vector<32x32xf32>
    %12 = arith.addf %10, %11 : vector<32x32xf32>
    %c0_12 = arith.constant 0 : index
    %c0_13 = arith.constant 0 : index
    %c0_14 = arith.constant 0 : index
    %13 = vector.load %arg3[%c0_12, %c0_13, %c0_14] : memref<4x32x32xf32, #tpu.memory_space<vmem>>, vector<1x32x32xf32>
    %14 = vector.shape_cast %13 : vector<1x32x32xf32> to vector<32x32xf32>
    %cst_15 = arith.constant dense<0.000000e+00> : vector<32x32xf32>
    %15 = tpu.matmul %12, %14, %cst_15 {dimension_numbers = #tpu.dot_dimension_numbers<[1], [0], [0], [1], [0, 0, 1, 1], [], []>} : vector<32x32xf32>, vector<32x32xf32>, vector<32x32xf32> -> vector<32x32xf32>
    %16 = vector.broadcast %1 : vector<1x32xf32> to vector<32x32xf32>
    %17 = arith.addf %15, %16 : vector<32x32xf32>
    %18 = math.tanh %17 : vector<32x32xf32>
    %c1_16 = arith.constant 1 : index
    %c0_17 = arith.constant 0 : index
    %c0_18 = arith.constant 0 : index
    %19 = vector.load %arg3[%c1_16, %c0_17, %c0_18] : memref<4x32x32xf32, #tpu.memory_space<vmem>>, vector<1x32x32xf32>
    %20 = vector.shape_cast %19 : vector<1x32x32xf32> to vector<32x32xf32>
    %cst_19 = arith.constant dense<0.000000e+00> : vector<32x32xf32>
    %21 = tpu.matmul %18, %20, %cst_19 {dimension_numbers = #tpu.dot_dimension_numbers<[1], [0], [0], [1], [0, 0, 1, 1], [], []>} : vector<32x32xf32>, vector<32x32xf32>, vector<32x32xf32> -> vector<32x32xf32>
    %22 = vector.broadcast %2 : vector<1x32xf32> to vector<32x32xf32>
    %23 = arith.addf %21, %22 : vector<32x32xf32>
    %c2_20 = arith.constant 2 : index
    %c0_21 = arith.constant 0 : index
    %c0_22 = arith.constant 0 : index
    %24 = vector.load %arg3[%c2_20, %c0_21, %c0_22] : memref<4x32x32xf32, #tpu.memory_space<vmem>>, vector<1x32x32xf32>
    %25 = vector.shape_cast %24 : vector<1x32x32xf32> to vector<32x32xf32>
    %cst_23 = arith.constant dense<0.000000e+00> : vector<32x32xf32>
    %26 = tpu.matmul %23, %25, %cst_23 {dimension_numbers = #tpu.dot_dimension_numbers<[1], [0], [0], [1], [0, 0, 1, 1], [], []>} : vector<32x32xf32>, vector<32x32xf32>, vector<32x32xf32> -> vector<32x32xf32>
    %27 = vector.broadcast %3 : vector<1x32xf32> to vector<32x32xf32>
    %28 = arith.addf %26, %27 : vector<32x32xf32>
    %29 = math.tanh %28 : vector<32x32xf32>
    %c3_24 = arith.constant 3 : index
    %c0_25 = arith.constant 0 : index
    %c0_26 = arith.constant 0 : index
    %30 = vector.load %arg3[%c3_24, %c0_25, %c0_26] : memref<4x32x32xf32, #tpu.memory_space<vmem>>, vector<1x32x32xf32>
    %31 = vector.shape_cast %30 : vector<1x32x32xf32> to vector<32x32xf32>
    %cst_27 = arith.constant dense<0.000000e+00> : vector<32x32xf32>
    %32 = tpu.matmul %29, %31, %cst_27 {dimension_numbers = #tpu.dot_dimension_numbers<[1], [0], [0], [1], [0, 0, 1, 1], [], []>} : vector<32x32xf32>, vector<32x32xf32>, vector<32x32xf32> -> vector<32x32xf32>
    %33 = vector.broadcast %4 : vector<1x32xf32> to vector<32x32xf32>
    %34 = arith.addf %32, %33 : vector<32x32xf32>
    %cst_28 = arith.constant dense<0.000000e+00> : vector<32xf32>
    %35 = vector.multi_reduction <add>, %34, %cst_28 [1] : vector<32x32xf32> to vector<32xf32>
    %36 = vector.shape_cast %35 : vector<32xf32> to vector<32x1xf32>
    %cst_29 = arith.constant 3.200000e+01 : f32
    %37 = vector.broadcast %cst_29 : f32 to vector<32x1xf32>
    %38 = arith.divf %36, %37 : vector<32x1xf32>
    %39 = vector.broadcast %38 : vector<32x1xf32> to vector<32x32xf32>
    %40 = arith.subf %34, %39 : vector<32x32xf32>
    %41 = arith.mulf %40, %40 : vector<32x32xf32>
    %cst_30 = arith.constant dense<0.000000e+00> : vector<32xf32>
    %42 = vector.multi_reduction <add>, %41, %cst_30 [1] : vector<32x32xf32> to vector<32xf32>
    %43 = vector.shape_cast %42 : vector<32xf32> to vector<32x1xf32>
    %cst_31 = arith.constant 3.200000e+01 : f32
    %44 = vector.broadcast %cst_31 : f32 to vector<32x1xf32>
    %45 = arith.divf %43, %44 : vector<32x1xf32>
    %46 = vector.broadcast %38 : vector<32x1xf32> to vector<32x32xf32>
    %47 = arith.subf %34, %46 : vector<32x32xf32>
    %cst_32 = arith.constant 9.99999997E-7 : f32
    %48 = vector.broadcast %cst_32 : f32 to vector<32x1xf32>
    %49 = arith.addf %45, %48 : vector<32x1xf32>
    %50 = math.rsqrt %49 : vector<32x1xf32>
    %51 = vector.broadcast %50 : vector<32x1xf32> to vector<32x32xf32>
    %52 = arith.mulf %47, %51 : vector<32x32xf32>
    %53 = vector.broadcast %5 : vector<1x32xf32> to vector<32x32xf32>
    %54 = arith.mulf %52, %53 : vector<32x32xf32>
    %55 = vector.broadcast %6 : vector<1x32xf32> to vector<32x32xf32>
    %56 = arith.addf %54, %55 : vector<32x32xf32>
    %57 = vector.shape_cast %56 : vector<32x32xf32> to vector<4x8x32xf32>
    %58 = vector.shape_cast %7 : vector<1x32xf32> to vector<1x1x32xf32>
    %59 = vector.broadcast %58 : vector<1x1x32xf32> to vector<4x8x32xf32>
    %60 = arith.mulf %57, %59 : vector<4x8x32xf32>
    %cst_33 = arith.constant dense<0.000000e+00> : vector<4x8xf32>
    %61 = vector.multi_reduction <add>, %60, %cst_33 [2] : vector<4x8x32xf32> to vector<4x8xf32>
    %c0_34 = arith.constant 0 : index
    %c0_35 = arith.constant 0 : index
    %62 = vector.load %arg5[%c0_34, %c0_35] : memref<9x3xf32, #tpu.memory_space<vmem>>, vector<8x3xf32>
    %c8 = arith.constant 8 : index
    %c0_36 = arith.constant 0 : index
    %63 = vector.load %arg5[%c8, %c0_36] : memref<9x3xf32, #tpu.memory_space<vmem>>, vector<1x3xf32>
    %cst_37 = arith.constant dense<0.000000e+00> : vector<4x3xf32>
    %64 = tpu.matmul %61, %62, %cst_37 {dimension_numbers = #tpu.dot_dimension_numbers<[1], [0], [0], [1], [0, 0, 1, 1], [], []>} : vector<4x8xf32>, vector<8x3xf32>, vector<4x3xf32> -> vector<4x3xf32>
    %65 = vector.broadcast %63 : vector<1x3xf32> to vector<4x3xf32>
    %66 = arith.addf %64, %65 : vector<4x3xf32>
    %c0_38 = arith.constant 0 : index
    %c0_39 = arith.constant 0 : index
    %67 = vector.load %arg6[%c0_38, %c0_39] : memref<4x3xf32, #tpu.memory_space<vmem>>, vector<4x3xf32>
    tpu.vector_store %arg6[%c0_38, %c0_39], %66 {strides = array<i32>} : memref<4x3xf32, #tpu.memory_space<vmem>>, vector<4x3xf32>,
    return
  }
  func.func @transform_0(%arg0: i32) -> (i32, i32) {
    %c0_i32 = arith.constant 0 : i32
    %c0_i32_0 = arith.constant 0 : i32
    return %arg0, %c0_i32 : i32, i32
  }
  func.func @transform_1(%arg0: i32) -> (i32, i32) {
    %c0_i32 = arith.constant 0 : i32
    %c0_i32_0 = arith.constant 0 : i32
    %c0_i32_1 = arith.constant 0 : i32
    return %c0_i32, %c0_i32_0 : i32, i32
  }
  func.func @transform_2(%arg0: i32) -> (i32, i32, i32) {
    %c0_i32 = arith.constant 0 : i32
    %c0_i32_0 = arith.constant 0 : i32
    %c0_i32_1 = arith.constant 0 : i32
    %c0_i32_2 = arith.constant 0 : i32
    return %c0_i32, %c0_i32_0, %c0_i32_1 : i32, i32, i32
  }
  func.func @transform_3(%arg0: i32) -> (i32, i32) {
    %c0_i32 = arith.constant 0 : i32
    %c0_i32_0 = arith.constant 0 : i32
    %c0_i32_1 = arith.constant 0 : i32
    return %c0_i32, %c0_i32_0 : i32, i32
  }
  func.func @transform_4(%arg0: i32) -> (i32, i32) {
    %c0_i32 = arith.constant 0 : i32
    %c0_i32_0 = arith.constant 0 : i32
    %c0_i32_1 = arith.constant 0 : i32
    return %c0_i32, %c0_i32_0 : i32, i32
  }
  func.func @transform_5(%arg0: i32) -> (i32, i32) {
    %c0_i32 = arith.constant 0 : i32
    %c0_i32_0 = arith.constant 0 : i32
    return %arg0, %c0_i32 : i32, i32
  }
}

</mosaic_0001>

<bundles_post_ra>
// kernel: tpu_custom_call.1
= control target key start
LH: loop header
LB: loop body
LE: loop exit
PB: predicated region body
PF: predicated region fallthrough
CT: control target
= control target key end

     0   :  { %10 = vsyncpa [#allocation3], 0  ;;  %s1302_s0 = inlined_call_operand.hbm [shape: f32[32,32], index: 0, kind: input, shape index: {}]   ;;  %s1303_s1 = inlined_call_operand.hbm [shape: f32[32,32], index: 1, kind: input, shape index: {}]   ;;  %s1304_s2 = inlined_call_operand.hbm [shape: f32[4,32,32], index: 2, kind: input, shape index: {}]   ;;  %s1305_s3 = inlined_call_operand.vmem [shape: f32[8,32], index: 3, kind: input, shape index: {}]   ;;  %s1306_s4 = inlined_call_operand.vmem [shape: f32[9,3], index: 4, kind: input, shape index: {}]   ;;  %s1307_s5 = inlined_call_operand.hbm [shape: f32[4,3], index: 5, kind: output, shape index: {}]  }
   0x1   :  { %11 = vsyncpa [#allocation6], 0 }
   0x2   :  { %12 = vsyncpa [#allocation4], 0  ;;  %s1138_s18 = smov [#allocation5]   ;;  %s1139_s20 = smov [#allocation2]  }
   0x3   :  { %s30_s19 = sshll.u32 %s1138_s18, 4  ;;  %s18_s21 = sshll.u32 %s1139_s20, 4  ;;  %s31_s19 = int_to_ptr.vmem [resolvable:$true] %s30_s19  ;;  %s1176_s21 = int_to_ptr.vmem [resolvable:$true] %s18_s21 }
   0x4   :  { %s1044_s24 = scalar_lea.hbm %s1303_s1, 512 }
   0x5   :  { %p1045_p0 = scmp.ne.s32.totalorder %s1303_s1, %s1044_s24  ;;  %p1048_p1 = scmp.lt.u32.totalorder %s1044_s24, %s1303_s1 }
   0x7   :  { %p1050_p2 = pnand %p1048_p1, %p1045_p0 }
   0x9   :  { %1053 = shalt.err (!%p1050_p2)
}
   0xa   :  { %s1054_s29 = scalar_lea.vmem %s31_s19, 512  ;;  %p1059_p4 = scmp.lt.s32.totalorder %s31_s19, %s31_s19 }
   0xb   :  { %p1055_p3 = scmp.ne.s32.totalorder %s31_s19, %s1054_s29  ;;  %p1060_p5 = scmp.lt.s32.totalorder %s1054_s29, %s1054_s29 }
   0xd   :  { %p1061_p6 = por %p1060_p5, %p1059_p4 }
   0xf   :  { %p1062_p7 = pnand %p1061_p6, %p1055_p3 }
  0x11   :  { %1065 = shalt.err (!%p1062_p7)
}
  0x12   :  { %s1140_s30 = smov 128   ;;  %s1141_s6 = smov 8  }
  0x13   :  { %36 = dma.hbm_to_vmem [thread:$0]  %s1303_s1, 512, %s31_s19, [#allocation6], %s1140_s30, %s1140_s30, %s1141_s6  }
  0x14   :  { %s1066_s11 = scalar_lea.hbm %s1302_s0, 512 }
  0x15   :  { %p1067_p8 = scmp.ne.s32.totalorder %s1302_s0, %s1066_s11  ;;  %p1070_p9 = scmp.lt.u32.totalorder %s1066_s11, %s1302_s0 }
  0x17   :  { %p1072_p10 = pnand %p1070_p9, %p1067_p8 }
  0x19   :  { %1075 = shalt.err (!%p1072_p10)
}
  0x1a   :  { %s1076_s16 = scalar_lea.vmem %s1176_s21, 512  ;;  %p1081_p12 = scmp.lt.s32.totalorder %s1176_s21, %s1176_s21 }
  0x1b   :  { %p1077_p11 = scmp.ne.s32.totalorder %s1176_s21, %s1076_s16  ;;  %p1082_p13 = scmp.lt.s32.totalorder %s1076_s16, %s1076_s16 }
  0x1d   :  { %p1083_p0 = por %p1082_p13, %p1081_p12 }
  0x1f   :  { %p1084_p1 = pnand %p1083_p0, %p1077_p11 }
  0x21   :  { %1087 = shalt.err (!%p1084_p1)
}
  0x22   :  { %24 = dma.hbm_to_vmem [thread:$0]  %s1302_s0, 512, %s1176_s21, [#allocation3], %s1140_s30, %s1140_s30, %s1141_s6  }
  0x23   :  { %s1142_s18 = smov [#allocation7]   ;;  %s1088_s23 = scalar_lea.hbm %s1304_s2, 2048 }
  0x24   :  { %s42_s19 = sshll.u32 %s1142_s18, 4  ;;  %p1089_p2 = scmp.ne.s32.totalorder %s1304_s2, %s1088_s23  ;;  %s43_s19 = int_to_ptr.vmem [resolvable:$true] %s42_s19 }
  0x25   :  { %p1092_p3 = scmp.lt.u32.totalorder %s1088_s23, %s1304_s2 }
  0x27   :  { %p1094_p4 = pnand %p1092_p3, %p1089_p2 }
  0x29   :  { %1097 = shalt.err (!%p1094_p4)
}
  0x2a   :  { %s1098_s28 = scalar_lea.vmem %s43_s19, 2048  ;;  %p1103_p6 = scmp.lt.s32.totalorder %s43_s19, %s43_s19 }
  0x2b   :  { %p1099_p5 = scmp.ne.s32.totalorder %s43_s19, %s1098_s28  ;;  %p1104_p7 = scmp.lt.s32.totalorder %s1098_s28, %s1098_s28 }
  0x2d   :  { %p1105_p8 = por %p1104_p7, %p1103_p6 }
  0x2f   :  { %p1106_p9 = pnand %p1105_p8, %p1099_p5 }
  0x31   :  { %1109 = shalt.err (!%p1106_p9)
}
  0x32   :  { %48 = dma.hbm_to_vmem [thread:$0]  %s1304_s2, 2048, %s43_s19, [#allocation6], %s1140_s30, %s1140_s30, %s1141_s6  }
  0x33   :  { %1132 = dma.done.wait [#allocation3], 512  }
  0x34   :  { %1133 = vsyncadd [#allocation3], 4294966784 }
  0x35   :  { %1134 = dma.done.wait [#allocation6], 2560  }
  0x36   :  { %1135 = vsyncadd [#allocation6], 4294964736  ;;  %vm82_vm0 = vcmask 261120   ;;  %v74_v0 = vld [vmem:[#allocation5] sm:$0xff]  ;;  %v75_v1 = vld [vmem:[#allocation5 + $0x8] sm:$0xff]  ;;  %vm1144_vm1 = vmmov 0  }
  0x37   :  { %v76_v2 = vld [vmem:[#allocation5 + $0x10] sm:$0xff]  ;;  %v972_v3 = vpack.c.bf16 %v75_v1, %v74_v0  ;;  %v77_v4 = vld [vmem:[#allocation5 + $0x18] sm:$0xff]  ;;  %v70_v5 = vld [vmem:[#allocation2] sm:$0xff]  ;;  %vm728_vm2 = vcmask 1041409   ;;  %vm730_vm3 = vcmask 1042434   ;;  %vm732_vm4 = vcmask 1043459  }
  0x38   :  { %v976_v6 = vpack.c.bf16 %v77_v4, %v76_v2  ;;  %905 = vmatprep.mubr.msk.f32.mxu0 %vm82_vm0, %v70_v5  ;;  %v180_v7 = vld [vmem:[#allocation7] sm:$0xff]  ;;  %v181_v8 = vld [vmem:[#allocation7 + $0x8] sm:$0xff]  ;;  %v72_v11 = vld [vmem:[#allocation2 + $0x10] sm:$0xff]  ;;  %vm734_vm5 = vcmask 64512   ;;  %s1145_s22 = smov [#allocation8]   ;;  %vm807_vm6 = vcmask 19456  }
  0x39   :  { %973 = vmatprep.subr.bf16.mxu0 %v972_v3  ;;  %v980_v9 = vpack.c.bf16 %v181_v8, %v180_v7  ;;  %v71_v10 = vld [vmem:[#allocation2 + $0x8] sm:$0xff]  ;;  %v73_v12 = vld [vmem:[#allocation2 + $0x18] sm:$0xff]  ;;  %v182_v13 = vld [vmem:[#allocation7 + $0x10] sm:$0xff]  ;;  %s815_s23 = sshll.u32 %s1145_s22, 4  ;;  %s816_s23 = int_to_ptr.vmem [resolvable:$true] %s815_s23 }
  0x3a   :  { %975 = vmatpush3.bf16.msra.mxu0 %v972_v3  ;;  %v183_v14 = vld [vmem:[#allocation7 + $0x18] sm:$0xff]  ;;  %v825_v16 = vld [vmem:[%s1305_s3] ss:$0 sm:$0xff]  ;;  %v291_v26 = vld [vmem:[#allocation7 + $0x28] sm:$0xff]  ;;  %s1110_s24 = scalar_lea.vmem %s816_s23, 64  ;;  %p1115_p11 = scmp.lt.s32.totalorder %s816_s23, %s816_s23 }
  0x3b   :  { %977 = vmatprep.subr.bf16.mxu0 %v976_v6  ;;  %981 = vmatprep.subr.bf16.mxu1 %v980_v9  ;;  %v984_v15 = vpack.c.bf16 %v183_v14, %v182_v13  ;;  %v290_v25 = vld [vmem:[#allocation7 + $0x20] sm:$0xff]  ;;  %v292_v28 = vld [vmem:[#allocation7 + $0x30] sm:$0xff]  ;;  %v293_v29 = vld [vmem:[#allocation7 + $0x38] sm:$0xff]  ;;  %p1111_p10 = scmp.ne.s32.totalorder %s816_s23, %s1110_s24  ;;  %p1116_p12 = scmp.lt.s32.totalorder %s1110_s24, %s1110_s24 }
  0x3c   :  { %983 = vmatpush3.bf16.msra.mxu1 %v980_v9  ;;  %v988_v27 = vpack.c.bf16 %v291_v26, %v290_v25  ;;  %v992_v30 = vpack.c.bf16 %v293_v29, %v292_v28  ;;  %v396_v31 = vld [vmem:[#allocation7 + $0x40] sm:$0xff]  ;;  %v397_v32 = vld [vmem:[#allocation7 + $0x48] sm:$0xff]  ;;  %v398_v47 = vld [vmem:[#allocation7 + $0x50] sm:$0xff] }
  0x3d   :  { %985 = vmatprep.subr.bf16.mxu1 %v984_v15  ;;  %v996_v33 = vpack.c.bf16 %v397_v32, %v396_v31  ;;  %v830_v34 = vld [vmem:[%s1305_s3 + $0x1] ss:$0 sm:$0xff]  ;;  %v399_v48 = vld [vmem:[#allocation7 + $0x58] sm:$0xff]  ;;  %v835_v50 = vld [vmem:[%s1305_s3 + $0x2] ss:$0 sm:$0xff]  ;;  %p1117_p13 = por %p1116_p12, %p1115_p11 }
  0x3e   :  { %979 = vmatpush3.bf16.msra.mxu0 %v976_v6  ;;  %v1000_v49 = vpack.c.bf16 %v399_v48, %v398_v47  ;;  %v506_v59 = vld [vmem:[#allocation7 + $0x60] sm:$0xff]  ;;  %v507_v60 = vld [vmem:[#allocation7 + $0x68] sm:$0xff]  ;;  %v508_v62 = vld [vmem:[#allocation7 + $0x70] sm:$0xff] }
  0x3f   :  { %989 = vmatprep.subr.bf16.mxu0 %v988_v27  ;;  %v1004_v61 = vpack.c.bf16 %v507_v60, %v506_v59  ;;  %v509_v63 = vld [vmem:[#allocation7 + $0x78] sm:$0xff]  ;;  %v840_v1 = vld [vmem:[%s1305_s3 + $0x3] ss:$0 sm:$0xff]  ;;  %v845_v14 = vld [vmem:[%s1305_s3 + $0x4] ss:$0 sm:$0xff]  ;;  %p1118_p0 = pnand %p1117_p13, %p1111_p10 }
  0x40   :  { %987 = vmatpush3.bf16.msra.mxu1 %v984_v15  ;;  %v1008_v0 = vpack.c.bf16 %v509_v63, %v508_v62  ;;  %v850_v60 = vld [vmem:[%s1305_s3 + $0x5] ss:$0 sm:$0xff]  ;;  %v851_v62 = vld [vmem:[%s1305_s3 + $0x6] ss:$0 sm:$0xff] }
  0x41   :  { %906 = vmatmul.mubr.msk.f32.vlgmr.msra.gmra.mrb[0].mxu0 %vm82_vm0, %v71_v10  ;;  %997 = vmatprep.subr.bf16.mxu1 %v996_v33 }
  0x42   :  { %908 = vmatprep.mubr.msk.f32.mxu0 %vm82_vm0, %v72_v11  ;;  %991 = vmatpush3.bf16.msra.mxu0 %v988_v27 }
  0x43   :  { %993 = vmatprep.subr.bf16.mxu0 %v992_v30 }
  0x45   :  { %909 = vmatmul.mubr.msk.f32.gmra.mrb[2].mxu0 %vm82_vm0, %v73_v12 }
  0x46   :  { %995 = vmatpush3.bf16.msra.mxu0 %v992_v30 }
  0x47   :  { %1005 = vmatprep.subr.bf16.mxu0 %v1004_v61 }
 0x114   :  { %v907_v17 = vpop.f32.mrb[0].mxu0 }
 0x115   :  { %v161_v18 = vpop.f32.mrb[1].mxu0  ;;  %v167_v20 = vadd.f32 %v907_v17, %v825_v16 }
 0x116   :  { %v162_v19 = vadd.f32 %v825_v16, %v161_v18 }
 0x118   :  { %v910_v21 = vpop.f32.mrb[2].mxu0  ;;  %919 = vmatprep.mubr.msk.f32.mxu1 %vm82_vm0, %v162_v19 }
 0x119   :  { %v171_v22 = vpop.f32.mrb[3].mxu0  ;;  %920 = vmatmul.mubr.msk.f32.vlgmr.msra.gmra.mrb[0].mxu1 %vm82_vm0, %v167_v20  ;;  %v177_v24 = vadd.f32 %v910_v21, %v825_v16 }
 0x11a   :  { %v172_v23 = vadd.f32 %v825_v16, %v171_v22  ;;  %999 = vmatpush3.bf16.msra.mxu1 %v996_v33 }
 0x11b   :  { %1001 = vmatprep.subr.bf16.mxu1 %v1000_v49 }
 0x11c   :  { %922 = vmatprep.mubr.msk.f32.mxu1 %vm82_vm0, %v172_v23 }
 0x11d   :  { %923 = vmatmul.mubr.msk.f32.gmra.mrb[2].mxu1 %vm82_vm0, %v177_v24 }
 0x11e   :  { %1003 = vmatpush3.bf16.msra.mxu1 %v1000_v49 }
 0x1ec   :  { %v921_v35 = vpop.f32.mrb[0].mxu1 }
 0x1ed   :  { %v272_v36 = vadd.f32 %v921_v35, %v830_v34  ;;  %v266_v37 = vpop.f32.mrb[1].mxu1 }
 0x1ee   :  { %v267_v38 = vadd.f32 %v830_v34, %v266_v37 }
 0x1f0   :  { %1020 = vtanh.f32 %v267_v38  ;;  %v924_v39 = vpop.f32.mrb[2].mxu1 }
 0x1f1   :  { %1022 = vtanh.f32 %v272_v36  ;;  %v282_v40 = vadd.f32 %v924_v39, %v830_v34  ;;  %v276_v41 = vpop.f32.mrb[3].mxu1 }
 0x1f2   :  { %v277_v42 = vadd.f32 %v830_v34, %v276_v41 }
 0x1f4   :  { %1024 = vtanh.f32 %v277_v42 }
 0x1f5   :  { %1026 = vtanh.f32 %v282_v40 }
 0x1fa   :  { %v1021_v43 = vpop.eup %1020 }
 0x1fb   :  { %v1023_v44 = vpop.eup %1022  ;;  %933 = vmatprep.mubr.msk.f32.mxu0 %vm82_vm0, %v1021_v43 }
 0x1fc   :  { %934 = vmatmul.mubr.msk.f32.vlgmr.msra.gmra.mrb[4].mxu0 %vm82_vm0, %v1023_v44 }
 0x1fd   :  { %1007 = vmatpush3.bf16.msra.mxu0 %v1004_v61 }
 0x1fe   :  { %v1025_v45 = vpop.eup %1024  ;;  %1009 = vmatprep.subr.bf16.mxu0 %v1008_v0 }
 0x1ff   :  { %v1027_v46 = vpop.eup %1026  ;;  %936 = vmatprep.mubr.msk.f32.mxu0 %vm82_vm0, %v1025_v45 }
 0x200   :  { %937 = vmatmul.mubr.msk.f32.gmra.mrb[6].mxu0 %vm82_vm0, %v1027_v46 }
 0x201   :  { %1011 = vmatpush3.bf16.msra.mxu0 %v1008_v0 }
 0x2cf   :  { %v935_v51 = vpop.f32.mrb[4].mxu0 }
 0x2d0   :  { %v376_v52 = vpop.f32.mrb[5].mxu0  ;;  %v382_v54 = vadd.f32 %v935_v51, %v835_v50 }
 0x2d1   :  { %v377_v53 = vadd.f32 %v835_v50, %v376_v52 }
 0x2d3   :  { %v938_v55 = vpop.f32.mrb[6].mxu0  ;;  %947 = vmatprep.mubr.msk.f32.mxu1 %vm82_vm0, %v377_v53 }
 0x2d4   :  { %v386_v56 = vpop.f32.mrb[7].mxu0  ;;  %948 = vmatmul.mubr.msk.f32.vlgmr.msra.gmra.mrb[4].mxu1 %vm82_vm0, %v382_v54  ;;  %v392_v58 = vadd.f32 %v938_v55, %v835_v50 }
 0x2d5   :  { %v387_v57 = vadd.f32 %v835_v50, %v386_v56 }
 0x2d7   :  { %950 = vmatprep.mubr.msk.f32.mxu1 %vm82_vm0, %v387_v57 }
 0x2d8   :  { %951 = vmatmul.mubr.msk.f32.gmra.mrb[6].mxu1 %vm82_vm0, %v392_v58 }
 0x3a7   :  { %v949_v2 = vpop.f32.mrb[4].mxu1 }
 0x3a8   :  { %v488_v3 = vadd.f32 %v949_v2, %v840_v1  ;;  %v482_v4 = vpop.f32.mrb[5].mxu1 }
 0x3a9   :  { %v483_v5 = vadd.f32 %v840_v1, %v482_v4 }
 0x3ab   :  { %1028 = vtanh.f32 %v483_v5  ;;  %v952_v6 = vpop.f32.mrb[6].mxu1 }
 0x3ac   :  { %1030 = vtanh.f32 %v488_v3  ;;  %v498_v7 = vadd.f32 %v952_v6, %v840_v1  ;;  %v492_v8 = vpop.f32.mrb[7].mxu1 }
 0x3ad   :  { %v493_v9 = vadd.f32 %v840_v1, %v492_v8  ;;  %v852_v1 = vld [vmem:[%s1305_s3 + $0x7] ss:$0 sm:$0xff] }
 0x3af   :  { %1032 = vtanh.f32 %v493_v9 }
 0x3b0   :  { %1034 = vtanh.f32 %v498_v7 }
 0x3b5   :  { %v1029_v10 = vpop.eup %1028 }
 0x3b6   :  { %v1031_v11 = vpop.eup %1030  ;;  %961 = vmatprep.mubr.msk.f32.mxu0 %vm82_vm0, %v1029_v10 }
 0x3b7   :  { %962 = vmatmul.mubr.msk.f32.vlgmr.msra.gmra.mrb[8].mxu0 %vm82_vm0, %v1031_v11 }
 0x3b9   :  { %v1033_v12 = vpop.eup %1032 }
 0x3ba   :  { %v1035_v13 = vpop.eup %1034  ;;  %964 = vmatprep.mubr.msk.f32.mxu0 %vm82_vm0, %v1033_v12 }
 0x3bb   :  { %965 = vmatmul.mubr.msk.f32.gmra.mrb[10].mxu0 %vm82_vm0, %v1035_v13 }
 0x48a   :  { %v963_v15 = vpop.f32.mrb[8].mxu0 }
 0x48b   :  { %v592_v16 = vpop.f32.mrb[9].mxu0  ;;  %v598_v18 = vadd.f32 %v963_v15, %v845_v14 }
 0x48c   :  { %v593_v17 = vadd.f32 %v845_v14, %v592_v16 }
 0x48d   :  { %v614_v25 = vsel %vm82_vm0, %v598_v18, 0.0 }
 0x48e   :  { %v966_v19 = vpop.f32.mrb[10].mxu0  ;;  %v611_v20 = vsel %vm82_vm0, %v593_v17, 0.0 }
 0x48f   :  { %v602_v21 = vpop.f32.mrb[11].mxu0  ;;  %612 = vadd.xlane.f32.xlu0 %v611_v20  ;;  %v608_v23 = vadd.f32 %v966_v19, %v845_v14 }
 0x490   :  { %v603_v22 = vadd.f32 %v845_v14, %v602_v21 }
 0x491   :  { %v620_v26 = vsel %vm82_vm0, %v608_v23, 0.0 }
 0x492   :  { %v617_v24 = vsel %vm82_vm0, %v603_v22, 0.0 }
 0x493   :  { %618 = vadd.xlane.f32.xlu1 %v617_v24  ;;  %615 = vadd.xlane.f32.xlu0 %v614_v25  ;;  %v710_v24 = vlaneseq }
 0x495   :  { %v711_v25 = vand.u32 127, %v710_v24 }
 0x497   :  { %621 = vadd.xlane.f32.xlu1 %v620_v26  ;;  %v713_v26 = vshrl.u32 %v710_v24, 7 }
 0x51c   :  { %v613_v27 = vpop.xlane.xlu0 %612 }
 0x51d   :  { %v624_v28 = vmul.f32 0.03125, %v613_v27 }
 0x51f   :  { %v628_v29 = vsub.f32 %v593_v17, %v624_v28  ;;  %v714_v28 = vsub.s32 %v711_v25, %v713_v26 }
 0x520   :  { %v619_v30 = vpop.xlane.xlu1 %618  ;;  %v616_v31 = vpop.xlane.xlu0 %615 }
 0x521   :  { %v626_v32 = vmul.f32 0.03125, %v619_v30  ;;  %v625_v33 = vmul.f32 0.03125, %v616_v31  ;;  %v632_v34 = vmul.f32 %v628_v29, %v628_v29 }
 0x523   :  { %v630_v35 = vsub.f32 %v603_v22, %v626_v32  ;;  %v629_v36 = vsub.f32 %v598_v18, %v625_v33  ;;  %v636_v37 = vsel %vm82_vm0, %v632_v34, 0.0  ;;  %v700_v22 = vld [vmem:[%s1306_s4] sm:$0xff] }
 0x524   :  { %v622_v38 = vpop.xlane.xlu1 %621  ;;  %637 = vadd.xlane.f32.xlu0 %v636_v37 }
 0x525   :  { %v627_v39 = vmul.f32 0.03125, %v622_v38  ;;  %v634_v40 = vmul.f32 %v630_v35, %v630_v35  ;;  %v633_v41 = vmul.f32 %v629_v36, %v629_v36 }
 0x527   :  { %v631_v42 = vsub.f32 %v608_v23, %v627_v39  ;;  %v642_v43 = vsel %vm82_vm0, %v634_v40, 0.0  ;;  %v639_v44 = vsel %vm82_vm0, %v633_v41, 0.0  ;;  %v1143_v23 = vmov 0.0   ;;  %v853_v39 = vld [vmem:[%s1306_s4 + $0x8] ss:$0 sm:$0xff] }
 0x528   :  { %643 = vadd.xlane.f32.xlu0 %v642_v43  ;;  %640 = vadd.xlane.f32.xlu1 %v639_v44 }
 0x529   :  { %v635_v45 = vmul.f32 %v631_v42, %v631_v42  ;;  %967 = vmatprep.subr.mxu1 %v1143_v23  ;;  %969 = vmatprep.mubr.msk.f32.mxu1 %vm1144_vm1, %v1143_v23 }
 0x52a   :  { %968 = vmatpush3.msra.mxu1 %v700_v22 }
 0x52b   :  { %v645_v46 = vsel %vm82_vm0, %v635_v45, 0.0 }
 0x52c   :  { %646 = vadd.xlane.f32.xlu1 %v645_v46 }
 0x5b1   :  { %v638_v47 = vpop.xlane.xlu0 %637 }
 0x5b2   :  { %v648_v48 = vmul.f32 0.03125, %v638_v47 }
 0x5b4   :  { %v652_v49 = vadd.f32 1e-06, %v648_v48 }
 0x5b5   :  { %v641_v50 = vpop.xlane.xlu1 %640  ;;  %v644_v51 = vpop.xlane.xlu0 %643 }
 0x5b6   :  { %1036 = vrsqrt.f32 %v652_v49  ;;  %v649_v52 = vmul.f32 0.03125, %v641_v50  ;;  %v650_v53 = vmul.f32 0.03125, %v644_v51 }
 0x5b8   :  { %v653_v54 = vadd.f32 1e-06, %v649_v52  ;;  %v654_v55 = vadd.f32 1e-06, %v650_v53 }
 0x5b9   :  { %v647_v56 = vpop.xlane.xlu1 %646 }
 0x5ba   :  { %1038 = vrsqrt.f32 %v653_v54  ;;  %v651_v57 = vmul.f32 0.03125, %v647_v56 }
 0x5bb   :  { %1040 = vrsqrt.f32 %v654_v55 }
 0x5bc   :  { %v655_v58 = vadd.f32 1e-06, %v651_v57 }
 0x5be   :  { %1042 = vrsqrt.f32 %v655_v58 }
 0x5c0   :  { %v1037_v59 = vpop.eup %1036 }
 0x5c1   :  { %v660_v61 = vmul.f32 %v1037_v59, %v628_v29 }
 0x5c3   :  { %v668_v63 = vmul.f32 %v850_v60, %v660_v61 }
 0x5c4   :  { %v1039_v0 = vpop.eup %1038 }
 0x5c5   :  { %v1041_v2 = vpop.eup %1040  ;;  %v676_v3 = vadd.f32 %v851_v62, %v668_v63  ;;  %v661_v4 = vmul.f32 %v1039_v0, %v629_v36 }
 0x5c6   :  { %v662_v5 = vmul.f32 %v1041_v2, %v630_v35 }
 0x5c7   :  { %v684_v6 = vmul.f32 %v852_v1, %v676_v3  ;;  %v669_v7 = vmul.f32 %v850_v60, %v661_v4 }
 0x5c8   :  { %v1043_v8 = vpop.eup %1042  ;;  %v670_v9 = vmul.f32 %v850_v60, %v662_v5 }
 0x5c9   :  { %v688_v10 = vsel %vm82_vm0, %v684_v6, 0.0  ;;  %v677_v11 = vadd.f32 %v851_v62, %v669_v7  ;;  %v663_v12 = vmul.f32 %v1043_v8, %v631_v42 }
 0x5ca   :  { %689 = vadd.xlane.f32.xlu0 %v688_v10  ;;  %v678_v13 = vadd.f32 %v851_v62, %v670_v9 }
 0x5cb   :  { %v685_v14 = vmul.f32 %v852_v1, %v677_v11  ;;  %v671_v15 = vmul.f32 %v850_v60, %v663_v12 }
 0x5cc   :  { %v686_v16 = vmul.f32 %v852_v1, %v678_v13 }
 0x5cd   :  { %v691_v17 = vsel %vm82_vm0, %v685_v14, 0.0  ;;  %v679_v18 = vadd.f32 %v851_v62, %v671_v15 }
 0x5ce   :  { %692 = vadd.xlane.f32.xlu1 %v691_v17  ;;  %v694_v19 = vsel %vm82_vm0, %v686_v16, 0.0 }
 0x5cf   :  { %695 = vadd.xlane.f32.xlu0 %v694_v19  ;;  %v687_v20 = vmul.f32 %v852_v1, %v679_v18 }
 0x5d1   :  { %v697_v21 = vsel %vm82_vm0, %v687_v20, 0.0 }
 0x5d2   :  { %698 = vadd.xlane.f32.xlu1 %v697_v21 }
 0x657   :  { %v690_v27 = vpop.xlane.xlu0 %689 }
 0x658   :  { %v715_v30 = vrot.slane %v690_v27, %v714_v28 }
 0x65b   :  { %v693_v29 = vpop.xlane.xlu1 %692 }
 0x65c   :  { %v719_v31 = vrot.slane %v693_v29, %v714_v28  ;;  %v696_v32 = vpop.xlane.xlu0 %695 }
 0x65d   :  { %v723_v33 = vrot.slane %v696_v32, %v714_v28 }
 0x65e   :  { %v729_v34 = vsel %vm728_vm2, %v719_v31, %v715_v30 }
 0x65f   :  { %v699_v35 = vpop.xlane.xlu1 %698  ;;  %v731_v37 = vsel %vm730_vm3, %v723_v33, %v729_v34 }
 0x660   :  { %v727_v36 = vrot.slane %v699_v35, %v714_v28 }
 0x662   :  { %v733_v38 = vsel %vm732_vm4, %v727_v36, %v731_v37 }
 0x663   :  { %970 = vmatmul.mubr.msk.f32.vlgmr.msra.gmra.mrb[8].mxu1 %vm734_vm5, %v733_v38 }
 0x736   :  { %v803_v40 = vpop.f32.mrb[8].mxu1 }
 0x737   :  { %v804_v41 = vadd.f32 %v853_v39, %v803_v40  ;;  %v971_v42 = vpop.f32.mrb[9].mxu1 }
 0x739   :  { %808 = vst.msk [vmem:[#allocation8] sm:$0xf] %vm807_vm6, %v804_v41 }
 0x73a   :  { %1121 = shalt.err (!%p1118_p0)
}
 0x73b   :  { %s1122_s27 = scalar_lea.hbm %s1307_s5, 64 }
 0x73c   :  { %p1123_p1 = scmp.ne.s32.totalorder %s1307_s5, %s1122_s27  ;;  %p1126_p2 = scmp.lt.u32.totalorder %s1122_s27, %s1307_s5 }
 0x73e   :  { %p1128_p3 = pnand %p1126_p2, %p1123_p1 }
 0x740   :  { %1131 = shalt.err (!%p1128_p3)
}
 0x741   :  { %818 = dma.vmem_to_hbm [thread:$0]  %s816_s23, 64, %s1307_s5, [#allocation4]  }
 0x742   :  { %1136 = dma.done.wait [#allocation4], 64  }
 0x743   :  { %1137 = vsyncadd [#allocation4], 4294967232 }
 0x744   :  { %822 = vsyncpa [#allocation3], 1 }
 0x745   :  { %823 = vsyncpa [#allocation6], 1 }
 0x746   :  { %824 = vsyncpa [#allocation4], 1 }

</bundles_post_ra>
